<compile_context>
chip_gen: v7x
topology: tpu7x:2x2x1
jax: 0.10.0
libtpu: 0.0.40
codegen_flags: <defaults>
</compile_context>

<pallas_src>
import functools

import jax
import jax.numpy as jnp
from jax.experimental import pallas as pl
from jax.experimental.pallas import tpu as pltpu


def _round_up(v, m):
    return -(-v // m) * m


def _dwconv1d_kernel(*refs, k_taps, dilation, pad_left, length, halo, multi_tile):
    """One (batch-block, channel-block, L-tile) block of a depthwise 1-D conv.

    multi_tile=True : refs = (x_prev, x_cur, x_nxt, w, o, win)
    multi_tile=False: refs = (x_cur, w, o, win)

    x_cur : (BN, C, BL)    unpadded input lanes [s*BL, (s+1)*BL)
    x_prev: (BN, C, HALO)  lanes [s*BL-HALO, s*BL)          (clamped at s==0)
    x_nxt : (BN, C, HALO)  lanes [(s+1)*BL, (s+1)*BL+HALO)  (clamped at last s)
    w     : (C, K)         per-output-channel taps
    o     : (BN, C, BL)    output lanes [s*BL, (s+1)*BL)
    win   : (BN, C, W)     VMEM window scratch  [left | current | right]
    """
    if multi_tile:
        xp_ref, xc_ref, xn_ref, w_ref, o_ref, win_ref = refs
    else:
        xc_ref, w_ref, o_ref, win_ref = refs

    bl = xc_ref.shape[-1]
    total_pad = dilation * (k_taps - 1)

    if multi_tile:
        s = pl.program_id(2)
        # Left halo: lanes [s*bl - halo, s*bl).  Entirely left zero-padding iff s==0.
        prev = xp_ref[...].astype(jnp.float32)
        win_ref[:, :, :halo] = jnp.where(s > 0, prev, jnp.zeros_like(prev))
        # Current block: mask positions >= length (right padding / ragged tail).
        cur = xc_ref[...].astype(jnp.float32)
        if length % bl != 0:
            j = jax.lax.broadcasted_iota(jnp.int32, (1, 1, bl), 2)
            cur = jnp.where(s * bl + j < length, cur, 0.0)
        win_ref[:, :, halo:halo + bl] = cur
        # Right halo: lanes [(s+1)*bl, (s+1)*bl + halo); mask positions >= length.
        nxt = xn_ref[...].astype(jnp.float32)
        j = jax.lax.broadcasted_iota(jnp.int32, (1, 1, halo), 2)
        win_ref[:, :, halo + bl:] = jnp.where((s + 1) * bl + j < length, nxt, 0.0)
        base = halo - pad_left
    else:
        # Single spatial tile: window = [pad_left zeros | x | pad_right zeros].
        pad_right = total_pad - pad_left
        if pad_left > 0:
            win_ref[:, :, :pad_left] = jnp.zeros(
                win_ref.shape[:-1] + (pad_left,), jnp.float32)
        win_ref[:, :, pad_left:pad_left + bl] = xc_ref[...].astype(jnp.float32)
        if pad_right > 0:
            win_ref[:, :, pad_left + bl:] = jnp.zeros(
                win_ref.shape[:-1] + (pad_right,), jnp.float32)
        base = 0

    # VPU path: K shifted fused multiply-adds, per-channel taps broadcast over lanes.
    w = w_ref[...].astype(jnp.float32)[jnp.newaxis, :, :]        # (1, C, K)
    acc = win_ref[:, :, base:base + bl] * w[:, :, 0:1]
    for k in range(1, k_taps):
        off = base + k * dilation
        acc = acc + win_ref[:, :, off:off + bl] * w[:, :, k:k + 1]
    o_ref[...] = acc.astype(o_ref.dtype)


@functools.partial(
    jax.jit,
    static_argnames=("kernel_size", "dilation", "depth_multiplier", "block_l"),
)
def depthwise_conv1d(x, weight, *, kernel_size, dilation=1, depth_multiplier=1,
                     block_l=None):
    """x: (N, Cin, L), weight: (Cin*dm, 1, K) (PyTorch grouped-conv layout).

    Returns (N, Cin*dm, L) == nn.Conv1d(Cin, Cin*dm, K, stride=1, padding='same',
    dilation=dilation, groups=Cin, bias=False)(x).
    """
    n, cin, length = x.shape
    k = kernel_size
    dm = depth_multiplier
    cout = cin * dm
    assert weight.shape == (cout, 1, k), weight.shape

    total_pad = dilation * (k - 1)
    pad_left = total_pad // 2            # PyTorch 'same': extra pad goes on the right

    # depth_multiplier > 1: expand channels once in the wrapper (output channel c
    # reads input channel c // dm).  The in-kernel sublane interleave needed to do
    # this for free has no robust Mosaic lowering, so we accept one extra HBM pass
    # only in the (uncommon) dm > 1 case.  dm == 1 touches x exactly once.
    if dm > 1:
        x = jnp.repeat(x, dm, axis=1)    # (N, Cout, L)
    w2 = weight.reshape(cout, k)

    # ---- channel / batch block (sublane axis) ----
    if cout <= 128:
        c_tile = cout                                   # full channel dim per block
        bn = min(n, max(1, 256 // _round_up(cout, 8)))  # fold batches -> ~256 sublanes
        while n % bn:                                   # keep batch blocks non-ragged
            bn -= 1
    else:
        c_tile = min(256, (cout // 8) * 8)
        bn = 1
    n_bg = n // bn
    n_cg = pl.cdiv(cout, c_tile)

    # ---- spatial block (lane axis) ----
    halo = 128 * max(1, pl.cdiv(total_pad, 128))        # >= total_pad, multiple of 128
    bl_req = max(128, _round_up(1024 if block_l is None else block_l, 128))
    bl = _round_up(max(bl_req, halo), halo)             # multiple of halo (and of 128)
    if bl >= length:
        multi_tile = False
        bl = length                                     # exact, single L-tile
        n_lt = 1
        win_w = total_pad + length
    else:
        multi_tile = True
        n_lt = pl.cdiv(length, bl)
        win_w = bl + 2 * halo

    x_spec = pl.BlockSpec((bn, c_tile, bl), lambda b, c, s: (b, c, s))
    w_spec = pl.BlockSpec((c_tile, k), lambda b, c, s: (c, 0))
    out_spec = pl.BlockSpec((bn, c_tile, bl), lambda b, c, s: (b, c, s))

    if multi_tile:
        r = bl // halo                       # current-block width in halo-view blocks
        n_hb = pl.cdiv(length, halo)         # number of halo-view blocks along L
        prev_spec = pl.BlockSpec(
            (bn, c_tile, halo),
            lambda b, c, s: (b, c, jnp.maximum(s * r - 1, 0)))
        nxt_spec = pl.BlockSpec(
            (bn, c_tile, halo),
            lambda b, c, s: (b, c, jnp.minimum((s + 1) * r, n_hb - 1)))
        in_specs = [prev_spec, x_spec, nxt_spec, w_spec]
        args = (x, x, x, w2)
    else:
        in_specs = [x_spec, w_spec]
        args = (x, w2)

    kernel = functools.partial(
        _dwconv1d_kernel, k_taps=k, dilation=dilation, pad_left=pad_left,
        length=length, halo=halo, multi_tile=multi_tile)

    itemsize = jnp.dtype(x.dtype).itemsize
    halo_bytes = (n_bg * n_cg * n_lt * bn * c_tile * 2 * halo * itemsize
                  if multi_tile else 0)

    out = pl.pallas_call(
        kernel,
        out_shape=jax.ShapeDtypeStruct((n, cout, length), x.dtype),
        grid_spec=pltpu.PrefetchScalarGridSpec(
            num_scalar_prefetch=0,
            grid=(n_bg, n_cg, n_lt),
            in_specs=in_specs,
            out_specs=out_spec,
            scratch_shapes=[pltpu.VMEM((bn, c_tile, win_w), jnp.float32)],
        ),
        compiler_params=pltpu.CompilerParams(
            dimension_semantics=("parallel", "parallel", "parallel")),
        cost_estimate=pl.CostEstimate(
            flops=2 * n * cout * length * k,
            transcendentals=0,
            bytes_accessed=(x.size + n * cout * length) * itemsize
            + w2.size * jnp.dtype(w2.dtype).itemsize + halo_bytes),
    )(*args)
    return out


def _reference(x, weight, *, kernel_size, dilation, depth_multiplier):
    del depth_multiplier
    cin = x.shape[1]
    total_pad = dilation * (kernel_size - 1)
    pad_left = total_pad // 2
    pad_right = total_pad - pad_left
    return jax.lax.conv_general_dilated(
        x, weight,
        window_strides=(1,),
        padding=[(pad_left, pad_right)],
        rhs_dilation=(dilation,),
        dimension_numbers=("NCH", "OIH", "NCH"),
        feature_group_count=cin,
        precision=jax.lax.Precision.HIGHEST,
    )


def _check(x, w, *, kernel_size, dilation, depth_multiplier, block_l=None):
    out = depthwise_conv1d(x, w, kernel_size=kernel_size, dilation=dilation,
                           depth_multiplier=depth_multiplier, block_l=block_l)
    out = jax.block_until_ready(out)
    ref = _reference(x, w, kernel_size=kernel_size, dilation=dilation,
                     depth_multiplier=depth_multiplier)
    assert out.shape == ref.shape, (out.shape, ref.shape)
    err = float(jnp.max(jnp.abs(out - ref)))
    assert jnp.allclose(out, ref, atol=1e-4, rtol=1e-4), err
    return out


if __name__ == "__main__":
    key = jax.random.PRNGKey(0)
    k1, k2, k3, k4, k5, k6 = jax.random.split(key, 6)

    # Config 1: DepthwiseConv1D(dim_in=4, kernel_size=3, dilation_rate=2,
    #           depth_multiplier=2, padding='same', use_bias=False)
    # -> single L-tile path, batch folding, channel expansion.
    N, CIN, L = 2, 4, 16
    K, DIL, DM = 3, 2, 2
    COUT = CIN * DM
    bound = (1.0 / K) ** 0.5          # PyTorch init bound: 1/sqrt((Cin/groups)*K)
    x1 = jax.random.normal(k1, (N, CIN, L), dtype=jnp.float32)
    w1 = jax.random.uniform(k2, (COUT, 1, K), minval=-bound, maxval=bound,
                            dtype=jnp.float32)
    _check(x1, w1, kernel_size=K, dilation=DIL, depth_multiplier=DM)

    # Config 2: dm=1, K=5, dilation=2, odd channel count, multiple spatial tiles
    # (block_l=128, L=300 -> 3 tiles): exercises narrow halos + ragged L edge.
    N2, CIN2, L2 = 2, 6, 300
    K2, DIL2, DM2 = 5, 2, 1
    bound2 = (1.0 / K2) ** 0.5
    x2 = jax.random.normal(k3, (N2, CIN2, L2), dtype=jnp.float32)
    w2 = jax.random.uniform(k4, (CIN2 * DM2, 1, K2), minval=-bound2, maxval=bound2,
                            dtype=jnp.float32)
    _check(x2, w2, kernel_size=K2, dilation=DIL2, depth_multiplier=DM2, block_l=128)

    # Config 3: default 1024-lane tiles, batch folding (bn=3), ragged last tile.
    N3, CIN3, L3 = 3, 16, 1536
    K3, DIL3, DM3 = 3, 1, 1
    bound3 = (1.0 / K3) ** 0.5
    x3 = jax.random.normal(k5, (N3, CIN3, L3), dtype=jnp.float32)
    w3 = jax.random.uniform(k6, (CIN3 * DM3, 1, K3), minval=-bound3, maxval=bound3,
                            dtype=jnp.float32)
    _check(x3, w3, kernel_size=K3, dilation=DIL3, depth_multiplier=DM3)

    print("KERNEL_OK")
</pallas_src>

<mosaic_0001>
module attributes {stable_mosaic.version = 11 : i64} {
  func.func @_dwconv1d_kernel(%arg0: i32, %arg1: i32, %arg2: i32, %arg3: memref<2x8x16xf32, #tpu.memory_space<vmem>>, %arg4: memref<8x3xf32, #tpu.memory_space<vmem>>, %arg5: memref<2x8x16xf32, #tpu.memory_space<vmem>>, %arg6: memref<2x8x20xf32, #tpu.memory_space<vmem>>) attributes {dimension_semantics = [#tpu.dimension_semantics<parallel>, #tpu.dimension_semantics<parallel>, #tpu.dimension_semantics<parallel>], iteration_bounds = array<i64: 1, 1, 1>, scalar_prefetch = 0 : i64, scratch_operands = 1 : i64, tpu.core_type = #tpu.core_type<tc>, window_params = [{transform_indices = @transform_0, window_bounds = array<i64: 2, 8, 16>}, {transform_indices = @transform_1, window_bounds = array<i64: 8, 3>}, {transform_indices = @transform_2, window_bounds = array<i64: 2, 8, 16>}]} {
    %cst = arith.constant 0.000000e+00 : f32
    %0 = vector.broadcast %cst : f32 to vector<2x8x2xf32>
    %c0 = arith.constant 0 : index
    %c0_0 = arith.constant 0 : index
    %c0_1 = arith.constant 0 : index
    %1 = vector.load %arg6[%c0, %c0_0, %c0_1] : memref<2x8x20xf32, #tpu.memory_space<vmem>>, vector<2x8x2xf32>
    tpu.vector_store %arg6[%c0, %c0_0, %c0_1], %0 {strides = array<i32>} : memref<2x8x20xf32, #tpu.memory_space<vmem>>, vector<2x8x2xf32>,
    %c0_2 = arith.constant 0 : index
    %c0_3 = arith.constant 0 : index
    %c0_4 = arith.constant 0 : index
    %2 = vector.load %arg3[%c0_2, %c0_3, %c0_4] : memref<2x8x16xf32, #tpu.memory_space<vmem>>, vector<2x8x16xf32>
    %c0_5 = arith.constant 0 : index
    %c0_6 = arith.constant 0 : index
    %c2 = arith.constant 2 : index
    %3 = vector.load %arg6[%c0_5, %c0_6, %c2] : memref<2x8x20xf32, #tpu.memory_space<vmem>>, vector<2x8x16xf32>
    tpu.vector_store %arg6[%c0_5, %c0_6, %c2], %2 {strides = array<i32>} : memref<2x8x20xf32, #tpu.memory_space<vmem>>, vector<2x8x16xf32>,
    %cst_7 = arith.constant 0.000000e+00 : f32
    %4 = vector.broadcast %cst_7 : f32 to vector<2x8x2xf32>
    %c0_8 = arith.constant 0 : index
    %c0_9 = arith.constant 0 : index
    %c18 = arith.constant 18 : index
    %5 = vector.load %arg6[%c0_8, %c0_9, %c18] : memref<2x8x20xf32, #tpu.memory_space<vmem>>, vector<2x8x2xf32>
    tpu.vector_store %arg6[%c0_8, %c0_9, %c18], %4 {strides = array<i32>} : memref<2x8x20xf32, #tpu.memory_space<vmem>>, vector<2x8x2xf32>,
    %c0_10 = arith.constant 0 : index
    %c0_11 = arith.constant 0 : index
    %6 = vector.load %arg4[%c0_10, %c0_11] : memref<8x3xf32, #tpu.memory_space<vmem>>, vector<8x3xf32>
    %7 = vector.shape_cast %6 : vector<8x3xf32> to vector<1x8x3xf32>
    %c0_12 = arith.constant 0 : index
    %c0_13 = arith.constant 0 : index
    %c0_14 = arith.constant 0 : index
    %8 = vector.load %arg6[%c0_12, %c0_13, %c0_14] : memref<2x8x20xf32, #tpu.memory_space<vmem>>, vector<2x8x16xf32>
    %9 = vector.extract_strided_slice %7 {offsets = [0, 0, 0], sizes = [1, 8, 1], strides = [1, 1, 1]} : vector<1x8x3xf32> to vector<1x8x1xf32>
    %10 = vector.broadcast %9 : vector<1x8x1xf32> to vector<2x8x16xf32>
    %11 = arith.mulf %8, %10 : vector<2x8x16xf32>
    %c0_15 = arith.constant 0 : index
    %c0_16 = arith.constant 0 : index
    %c2_17 = arith.constant 2 : index
    %12 = vector.load %arg6[%c0_15, %c0_16, %c2_17] : memref<2x8x20xf32, #tpu.memory_space<vmem>>, vector<2x8x16xf32>
    %13 = vector.extract_strided_slice %7 {offsets = [0, 0, 1], sizes = [1, 8, 1], strides = [1, 1, 1]} : vector<1x8x3xf32> to vector<1x8x1xf32>
    %14 = vector.broadcast %13 : vector<1x8x1xf32> to vector<2x8x16xf32>
    %15 = arith.mulf %12, %14 : vector<2x8x16xf32>
    %16 = arith.addf %11, %15 : vector<2x8x16xf32>
    %c0_18 = arith.constant 0 : index
    %c0_19 = arith.constant 0 : index
    %c4 = arith.constant 4 : index
    %17 = vector.load %arg6[%c0_18, %c0_19, %c4] : memref<2x8x20xf32, #tpu.memory_space<vmem>>, vector<2x8x16xf32>
    %18 = vector.extract_strided_slice %7 {offsets = [0, 0, 2], sizes = [1, 8, 1], strides = [1, 1, 1]} : vector<1x8x3xf32> to vector<1x8x1xf32>
    %19 = vector.broadcast %18 : vector<1x8x1xf32> to vector<2x8x16xf32>
    %20 = arith.mulf %17, %19 : vector<2x8x16xf32>
    %21 = arith.addf %16, %20 : vector<2x8x16xf32>
    %c0_20 = arith.constant 0 : index
    %c0_21 = arith.constant 0 : index
    %c0_22 = arith.constant 0 : index
    %22 = vector.load %arg5[%c0_20, %c0_21, %c0_22] : memref<2x8x16xf32, #tpu.memory_space<vmem>>, vector<2x8x16xf32>
    tpu.vector_store %arg5[%c0_20, %c0_21, %c0_22], %21 {strides = array<i32>} : memref<2x8x16xf32, #tpu.memory_space<vmem>>, vector<2x8x16xf32>,
    return
  }
  func.func @transform_0(%arg0: i32, %arg1: i32, %arg2: i32) -> (i32, i32, i32) {
    %c0_i32 = arith.constant 0 : i32
    return %arg0, %arg1, %arg2 : i32, i32, i32
  }
  func.func @transform_1(%arg0: i32, %arg1: i32, %arg2: i32) -> (i32, i32) {
    %c0_i32 = arith.constant 0 : i32
    %c0_i32_0 = arith.constant 0 : i32
    return %arg1, %c0_i32 : i32, i32
  }
  func.func @transform_2(%arg0: i32, %arg1: i32, %arg2: i32) -> (i32, i32, i32) {
    %c0_i32 = arith.constant 0 : i32
    return %arg0, %arg1, %arg2 : i32, i32, i32
  }
}

</mosaic_0001>

<bundles_post_ra>
// kernel: depthwise_conv1d.1
= control target key start
LH: loop header
LB: loop body
LE: loop exit
PB: predicated region body
PF: predicated region fallthrough
CT: control target
= control target key end

     0   :  { %v130_v2 = vmov 1   ;;  %s131_s13 = smov 2   ;;  %vm12_vm0 = vcmask 15360   ;;  %s176_s0 = inlined_call_operand.vmem [shape: f32[2,8,16], index: 0, kind: input, shape index: {}]   ;;  %s177_s1 = inlined_call_operand.vmem [shape: f32[8,3], index: 1, kind: input, shape index: {}]   ;;  %s178_s2 = inlined_call_operand.hbm [shape: f32[2,8,16], index: 2, kind: output, shape index: {}]  }
   0x1   :  { %v31_v0 = vld [vmem:[%s177_s1] sm:$0xff]  ;;  %102 = vset.pattern.permute.xlu1 %v130_v2 }
   0x2   :  { %v15_v1 = vld [vmem:[%s176_s0] sm:$0xff] }
   0x3   :  { %19 = vrot.lane.b32.xlu0 %v15_v1, %s131_s13 }
   0x4   :  { %7 = vsyncpa [#allocation4], 0  ;;  %42 = vperm.xlu1 %102, %v31_v0   ;;  %v16_v3 = vld [vmem:[%s176_s0 + $0x8] sm:$0xff]  ;;  %v132_v4 = vmov 0   ;;  %v133_v5 = vmov 0.0   ;;  %v134_v6 = vmov 2  }
   0x5   :  { %104 = vset.pattern.permute.xlu0 %v132_v4  ;;  %13 = vst.msk [vmem:[#allocation2] sm:$0xff] %vm12_vm0, %v133_v5  ;;  %14 = vst.msk [vmem:[#allocation2 + $0x8] sm:$0xff] %vm12_vm0, %v133_v5  ;;  %vm25_vm1 = vcmask 146448   ;;  %vm28_vm2 = vcmask 162960   ;;  %s135_s0 = smov 126   ;;  %s136_s1 = smov 124  }
   0x6   :  { %vm73_vm3 = vcmask 130048   ;;  %s137_s16 = smov [#allocation3]  }
   0x7   :  { %21 = vrot.lane.b32.xlu0 %v16_v3, %s131_s13  ;;  %s81_s17 = sshll.u32 %s137_s16, 4  ;;  %s82_s17 = int_to_ptr.vmem [resolvable:$true] %s81_s17 }
   0x8   :  { %103 = vset.pattern.permute.xlu1 %v134_v6  ;;  %s106_s18 = scalar_lea.vmem %s82_s17, 256  ;;  %p111_p1 = scmp.lt.s32.totalorder %s82_s17, %s82_s17 }
   0x9   :  { %58 = vperm.xlu1 %103, %v31_v0   ;;  %p107_p0 = scmp.ne.s32.totalorder %s82_s17, %s106_s18  ;;  %p112_p2 = scmp.lt.s32.totalorder %s106_s18, %s106_s18 }
   0xb   :  { %36 = vperm.xlu0 %104, %v31_v0   ;;  %p113_p3 = por %p112_p2, %p111_p1 }
   0xd   :  { %p114_p4 = pnand %p113_p3, %p107_p0 }
   0xf   :  { %105 = vset.pattern.permute.xlu0 %v134_v6 }
  0x75   :  { %v20_v7 = vpop.permute.xlu0 %19 }
  0x76   :  { %26 = vst.msk [vmem:[#allocation2] sm:$0xff] %vm25_vm1, %v20_v7 }
  0x77   :  { %29 = vst.msk [vmem:[#allocation2] sm:$0xff] %vm28_vm2, %v133_v5 }
  0x79   :  { %v22_v8 = vpop.permute.xlu0 %21 }
  0x7a   :  { %27 = vst.msk [vmem:[#allocation2 + $0x8] sm:$0xff] %vm25_vm1, %v22_v8 }
  0x7b   :  { %30 = vst.msk [vmem:[#allocation2 + $0x8] sm:$0xff] %vm28_vm2, %v133_v5 }
  0x7e   :  { %v32_v9 = vld [vmem:[#allocation2] sm:$0xff] }
  0x82   :  { %v33_v12 = vld [vmem:[#allocation2 + $0x8] sm:$0xff] }
  0x83   :  { %v43_v10 = vpop.permute.xlu1 %42 }
  0x84   :  { %v45_v11 = vmul.f32 %v43_v10, %v32_v9  ;;  %v46_v13 = vmul.f32 %v43_v10, %v33_v12 }
  0x86   :  { %49 = vrot.lane.b32.xlu1 %v45_v11, %s135_s0 }
  0x88   :  { %v59_v14 = vpop.permute.xlu1 %58 }
  0x89   :  { %v61_v15 = vmul.f32 %v59_v14, %v32_v9  ;;  %v62_v16 = vmul.f32 %v59_v14, %v33_v12 }
  0x8a   :  { %51 = vrot.lane.b32.xlu1 %v46_v13, %s135_s0  ;;  %v37_v17 = vpop.permute.xlu0 %36 }
  0x8b   :  { %65 = vrot.lane.b32.xlu0 %v61_v15, %s136_s1  ;;  %v39_v18 = vmul.f32 %v37_v17, %v32_v9  ;;  %v40_v20 = vmul.f32 %v37_v17, %v33_v12 }
  0x8e   :  { %67 = vrot.lane.b32.xlu1 %v62_v16, %s136_s1 }
  0xf8   :  { %v50_v19 = vpop.permute.xlu1 %49 }
  0xf9   :  { %v55_v21 = vadd.f32 %v50_v19, %v39_v18 }
  0xfc   :  { %v52_v22 = vpop.permute.xlu1 %51 }
  0xfd   :  { %v66_v23 = vpop.permute.xlu0 %65  ;;  %v56_v25 = vadd.f32 %v52_v22, %v40_v20 }
  0xfe   :  { %v71_v24 = vadd.f32 %v66_v23, %v55_v21 }
 0x100   :  { %74 = vst.msk [vmem:[#allocation3] sm:$0xff] %vm73_vm3, %v71_v24  ;;  %v68_v26 = vpop.permute.xlu1 %67 }
 0x101   :  { %v72_v27 = vadd.f32 %v68_v26, %v56_v25 }
 0x103   :  { %75 = vst.msk [vmem:[#allocation3 + $0x8] sm:$0xff] %vm73_vm3, %v72_v27 }
 0x104   :  { %117 = shalt.err (!%p114_p4)
}
 0x105   :  { %s118_s21 = scalar_lea.hbm %s178_s2, 256 }
 0x106   :  { %p119_p5 = scmp.ne.s32.totalorder %s178_s2, %s118_s21  ;;  %p122_p6 = scmp.lt.u32.totalorder %s118_s21, %s178_s2 }
 0x108   :  { %p124_p7 = pnand %p122_p6, %p119_p5 }
 0x10a   :  { %127 = shalt.err (!%p124_p7)
}
 0x10b   :  { %s138_s26 = smov 128   ;;  %s139_s27 = smov 8  }
 0x10c   :  { %87 = dma.vmem_to_hbm [thread:$0]  %s82_s17, 256, %s178_s2, [#allocation4], %s138_s26, %s138_s26, %s139_s27  }
 0x10d   :  { %128 = dma.done.wait [#allocation4], 256  }
 0x10e   :  { %129 = vsyncadd [#allocation4], 4294967040 }
 0x10f   :  { %91 = vsyncpa [#allocation4], 1 }

</bundles_post_ra>
